<compile_context>
chip_gen: v7x
topology: tpu7x:2x2x1
jax: 0.10.0
libtpu: 0.0.40
codegen_flags: <defaults>
</compile_context>

<pallas_src>
import functools

import jax
import jax.numpy as jnp
import numpy as np
from jax import lax
from jax.experimental import pallas as pl
from jax.experimental.pallas import tpu as pltpu


def _attention_v2_kernel(*refs, num_heads, scale, qkv_bias):
    """Fused AttentionV2 forward for one (batch, q-tile) grid step.

    q_ref : (1, tq, Dq)     k_ref / v_ref : (1, Lk, Dk)
    wq_ref: (Dq, D)         wk_ref / wv_ref: (Dk, D)       wo_ref: (D, Dq)
    bq/bk/bv (optional): (1, D)                            bo_ref: (1, Dq)
    o_ref : (1, tq, Dq)
    scratch: q_scr (tq, D), k_scr (Lk, D), v_scr (Lk, D), y_scr (tq, D)
    """
    if qkv_bias:
        (q_ref, k_ref, v_ref, wq_ref, wk_ref, wv_ref,
         bq_ref, bk_ref, bv_ref, wo_ref, bo_ref,
         o_ref, q_scr, k_scr, v_scr, y_scr) = refs
    else:
        (q_ref, k_ref, v_ref, wq_ref, wk_ref, wv_ref,
         wo_ref, bo_ref,
         o_ref, q_scr, k_scr, v_scr, y_scr) = refs

    cd = q_scr.dtype
    D = q_scr.shape[-1]
    hd = D // num_heads

    # --- K/V projections: once per batch (q-tile axis is "arbitrary") ----------
    @pl.when(pl.program_id(1) == 0)
    def _project_kv():
        kp = jnp.dot(k_ref[0], wk_ref[...], preferred_element_type=jnp.float32)
        vp = jnp.dot(v_ref[0], wv_ref[...], preferred_element_type=jnp.float32)
        if qkv_bias:
            kp = kp + bk_ref[...]
            vp = vp + bv_ref[...]
        k_scr[...] = kp.astype(cd)
        v_scr[...] = vp.astype(cd)

    # --- Q projection for this q-tile; fold the softmax scale into Q -----------
    qp = jnp.dot(q_ref[0], wq_ref[...], preferred_element_type=jnp.float32)
    if qkv_bias:
        qp = qp + bq_ref[...]
    q_scr[...] = (qp * scale).astype(cd)

    # --- per-head softmax attention; head outputs concatenated into y_scr ------
    # Static slices at lane offset h*hd; per-head state flows through VMEM scratch
    # refs so nothing is register-carried across iterations.
    # TODO(synk): for very large num_heads / Lk, switch to lax.fori_loop and a KV
    #             grid axis with online softmax (flash-style) instead of unrolling.
    for h in range(num_heads):
        sl = slice(h * hd, (h + 1) * hd)
        s = lax.dot_general(q_scr[:, sl], k_scr[:, sl],
                            (((1,), (1,)), ((), ())),
                            preferred_element_type=jnp.float32)        # (tq, Lk)
        s = s - jnp.max(s, axis=-1, keepdims=True)
        e = jnp.exp(s)
        attn = e * pl.reciprocal(jnp.sum(e, axis=-1, keepdims=True), approx=True)
        y_scr[:, sl] = jnp.dot(attn.astype(cd), v_scr[:, sl],
                               preferred_element_type=jnp.float32).astype(cd)

    # --- single full-width output projection + bias -----------------------------
    out = jnp.dot(y_scr[...], wo_ref[...],
                  preferred_element_type=jnp.float32) + bo_ref[...]
    o_ref[0] = out.astype(o_ref.dtype)


def attention_v2_forward(q, k, v, params, *, num_heads, qkv_bias=False,
                         qk_scale=None, tq=None, compute_dtype=jnp.bfloat16):
    """q: (B, Lq, q_dim)   k, v: (B, Lk, k_dim)   returns (B, Lq, q_dim)."""
    B, Lq, Dq = q.shape
    Bk, Lk, Dk = k.shape
    assert B == Bk and v.shape == k.shape

    D = params["wq"].shape[1]                    # = max(q_dim, k_dim)
    assert D % num_heads == 0
    assert params["wq"].shape == (Dq, D)
    assert params["wk"].shape == (Dk, D) and params["wv"].shape == (Dk, D)
    assert params["wo"].shape == (D, Dq)
    hd = D // num_heads
    scale = float(qk_scale) if qk_scale is not None else float(hd) ** -0.5

    cd = compute_dtype
    # Cast activations & weights once (bf16 is the native MXU dtype on v5e/v6e/v7x);
    # biases stay f32 (added to the f32 accumulators).
    qc, kc, vc = q.astype(cd), k.astype(cd), v.astype(cd)
    wq_c = params["wq"].astype(cd)
    wk_c = params["wk"].astype(cd)
    wv_c = params["wv"].astype(cd)
    wo_c = params["wo"].astype(cd)
    bo_2 = params["bo"].reshape(1, Dq).astype(jnp.float32)
    if qkv_bias:
        bq_2 = params["bq"].reshape(1, D).astype(jnp.float32)
        bk_2 = params["bk"].reshape(1, D).astype(jnp.float32)
        bv_2 = params["bv"].reshape(1, D).astype(jnp.float32)

    # q-tile size: full sequence when small; otherwise 128/256-wide 8-aligned tiles
    # (keeps the f32 (tq, Lk) score tile modest -- important on v7x's 64 MiB VMEM).
    if tq is None:
        tq = Lq
        for cand in (256, 128):
            if Lq > cand and Lq % cand == 0:
                tq = cand
                break
    assert Lq % tq == 0 and (tq == Lq or tq % 8 == 0)
    grid = (B, Lq // tq)

    # Explicit VMEM budget from the real dtypes (double-buffered blocks + weights +
    # scratch + f32 intermediates) with 2x headroom; capped at 40 MiB (v7x-safe).
    cs = jnp.dtype(cd).itemsize
    osz = jnp.dtype(q.dtype).itemsize
    blk_bytes = 2 * ((tq * Dq) * cs + 2 * (Lk * Dk) * cs + (tq * Dq) * osz)
    w_elems = wq_c.size + wk_c.size + wv_c.size + wo_c.size
    b_elems = bo_2.size + (3 * D if qkv_bias else 0)
    w_bytes = 2 * (w_elems * cs + b_elems * 4)
    scr_bytes = (2 * tq * D + 2 * Lk * D) * cs
    f32_tmp = (tq * D + 2 * Lk * D + 3 * tq * Lk + tq * Dq) * 4
    vmem_limit = int(min(40 * 1024 * 1024,
                         max(8 * 1024 * 1024,
                             2 * (blk_bytes + w_bytes + scr_bytes + f32_tmp))))

    in_specs = [
        pl.BlockSpec((1, tq, Dq), lambda b, i: (b, i, 0)),
        pl.BlockSpec((1, Lk, Dk), lambda b, i: (b, 0, 0)),
        pl.BlockSpec((1, Lk, Dk), lambda b, i: (b, 0, 0)),
        pl.BlockSpec((Dq, D), lambda b, i: (0, 0)),
        pl.BlockSpec((Dk, D), lambda b, i: (0, 0)),
        pl.BlockSpec((Dk, D), lambda b, i: (0, 0)),
    ]
    args = [qc, kc, vc, wq_c, wk_c, wv_c]
    if qkv_bias:
        in_specs += [pl.BlockSpec((1, D), lambda b, i: (0, 0))] * 3
        args += [bq_2, bk_2, bv_2]
    in_specs += [
        pl.BlockSpec((D, Dq), lambda b, i: (0, 0)),
        pl.BlockSpec((1, Dq), lambda b, i: (0, 0)),
    ]
    args += [wo_c, bo_2]

    kernel = functools.partial(_attention_v2_kernel, num_heads=num_heads,
                               scale=scale, qkv_bias=qkv_bias)

    return pl.pallas_call(
        kernel,
        out_shape=jax.ShapeDtypeStruct((B, Lq, Dq), q.dtype),
        grid_spec=pltpu.PrefetchScalarGridSpec(
            num_scalar_prefetch=0,
            grid=grid,
            in_specs=in_specs,
            out_specs=pl.BlockSpec((1, tq, Dq), lambda b, i: (b, i, 0)),
            scratch_shapes=[
                pltpu.VMEM((tq, D), cd),   # scaled Q projection (this q-tile)
                pltpu.VMEM((Lk, D), cd),   # K projection (per batch, reused)
                pltpu.VMEM((Lk, D), cd),   # V projection (per batch, reused)
                pltpu.VMEM((tq, D), cd),   # concatenated per-head outputs
            ],
        ),
        compiler_params=pltpu.CompilerParams(
            dimension_semantics=("parallel", "arbitrary"),
            vmem_limit_bytes=vmem_limit),
    )(*args)


# ------------------------------ pure-JAX reference ------------------------------
def _ref_attention_v2(q, k, v, p, *, num_heads, qk_scale=None):
    B, Lq, Dq = q.shape
    _, Lk, Dk = k.shape
    D = p["wq"].shape[1]
    hd = D // num_heads
    scale = qk_scale if qk_scale is not None else hd ** (-0.5)

    Q = q @ p["wq"] + p["bq"]
    K = k @ p["wk"] + p["bk"]
    V = v @ p["wv"] + p["bv"]

    Qh = Q.reshape(B, Lq, num_heads, hd).transpose(0, 2, 1, 3)
    Kh = K.reshape(B, Lk, num_heads, hd).transpose(0, 2, 1, 3)
    Vh = V.reshape(B, Lk, num_heads, hd).transpose(0, 2, 1, 3)

    attn = jax.nn.softmax(jnp.einsum("bhqd,bhkd->bhqk", Qh, Kh) * scale, axis=-1)
    y = jnp.einsum("bhqk,bhkd->bhqd", attn, Vh)
    y = y.transpose(0, 2, 1, 3).reshape(B, Lq, D)
    return y @ p["wo"] + p["bo"]


def _make_params(key, q_dim, k_dim, num_heads, qkv_bias=False):
    dim = max(q_dim, k_dim)
    ks = jax.random.split(key, 8)

    def init(kk, shape, s=0.05):
        return jax.random.normal(kk, shape, jnp.float32) * s

    wq = init(ks[0], (q_dim, dim))
    wk = init(ks[1], (k_dim, dim))
    wv = init(ks[2], (k_dim, dim))
    wo = init(ks[3], (dim, q_dim))
    bo = init(ks[4], (q_dim,), 0.1)
    if qkv_bias:
        bq = init(ks[5], (dim,), 0.1)
        bk = init(ks[6], (dim,), 0.1)
        bv = init(ks[7], (dim,), 0.1)
    else:
        bq = jnp.zeros((dim,), jnp.float32)
        bk = jnp.zeros((dim,), jnp.float32)
        bv = jnp.zeros((dim,), jnp.float32)
    return {"wq": wq, "wk": wk, "wv": wv, "bq": bq, "bk": bk, "bv": bv,
            "wo": wo, "bo": bo}


if __name__ == "__main__":
    key = jax.random.PRNGKey(0)
    kq, kk, kv, kp = jax.random.split(key, 4)

    # Small shapes consistent with the module: q/k from different feature dims,
    # dim = max(q_dim, k_dim) = 32, num_heads = 8 (module default), head_dim = 4.
    B, Lq, Lk = 2, 8, 16
    q_dim, k_dim, num_heads = 32, 16, 8

    q = jax.random.normal(kq, (B, Lq, q_dim), jnp.float32)
    k = jax.random.normal(kk, (B, Lk, k_dim), jnp.float32)
    v = jax.random.normal(kv, (B, Lk, k_dim), jnp.float32)
    params = _make_params(kp, q_dim, k_dim, num_heads, qkv_bias=False)

    fwd = jax.jit(functools.partial(attention_v2_forward, num_heads=num_heads,
                                    qkv_bias=False))
    out = jax.block_until_ready(fwd(q, k, v, params))

    ref = _ref_attention_v2(q, k, v, params, num_heads=num_heads)
    # bf16 MXU operands + approx reciprocal -> compare against the f32 reference
    # with bf16-level tolerances.
    np.testing.assert_allclose(np.asarray(out), np.asarray(ref), rtol=2e-2, atol=2e-2)

    print("KERNEL_OK")
</pallas_src>

<mosaic_0001>
module attributes {stable_mosaic.version = 11 : i64} {
  func.func @_attention_v2_kernel(%arg0: i32, %arg1: i32, %arg2: memref<1x8x32xbf16, #tpu.memory_space<vmem>>, %arg3: memref<1x16x16xbf16, #tpu.memory_space<vmem>>, %arg4: memref<1x16x16xbf16, #tpu.memory_space<vmem>>, %arg5: memref<32x32xbf16, #tpu.memory_space<vmem>>, %arg6: memref<16x32xbf16, #tpu.memory_space<vmem>>, %arg7: memref<16x32xbf16, #tpu.memory_space<vmem>>, %arg8: memref<32x32xbf16, #tpu.memory_space<vmem>>, %arg9: memref<1x32xf32, #tpu.memory_space<vmem>>, %arg10: memref<1x8x32xf32, #tpu.memory_space<vmem>>, %arg11: memref<8x32xbf16, #tpu.memory_space<vmem>>, %arg12: memref<16x32xbf16, #tpu.memory_space<vmem>>, %arg13: memref<16x32xbf16, #tpu.memory_space<vmem>>, %arg14: memref<8x32xbf16, #tpu.memory_space<vmem>>) attributes {dimension_semantics = [#tpu.dimension_semantics<parallel>, #tpu.dimension_semantics<arbitrary>], iteration_bounds = array<i64: 2, 1>, scalar_prefetch = 0 : i64, scratch_operands = 4 : i64, tpu.core_type = #tpu.core_type<tc>, window_params = [{transform_indices = @transform_0, window_bounds = array<i64: 1, 8, 32>}, {transform_indices = @transform_1, window_bounds = array<i64: 1, 16, 16>}, {transform_indices = @transform_2, window_bounds = array<i64: 1, 16, 16>}, {pipeline_mode = #tpu.pipeline_mode<synchronous>, transform_indices = @transform_3, window_bounds = array<i64: 32, 32>}, {pipeline_mode = #tpu.pipeline_mode<synchronous>, transform_indices = @transform_4, window_bounds = array<i64: 16, 32>}, {pipeline_mode = #tpu.pipeline_mode<synchronous>, transform_indices = @transform_5, window_bounds = array<i64: 16, 32>}, {pipeline_mode = #tpu.pipeline_mode<synchronous>, transform_indices = @transform_6, window_bounds = array<i64: 32, 32>}, {pipeline_mode = #tpu.pipeline_mode<synchronous>, transform_indices = @transform_7, window_bounds = array<i64: 1, 32>}, {transform_indices = @transform_8, window_bounds = array<i64: 1, 8, 32>}]} {
    %c0_i32 = arith.constant 0 : i32
    %0 = arith.cmpi eq, %arg1, %c0_i32 : i32
    %1 = arith.extui %0 : i1 to i32
    %c0_i32_0 = arith.constant 0 : i32
    %2 = arith.cmpi ne, %1, %c0_i32_0 : i32
    scf.if %2 {
      %c0_107 = arith.constant 0 : index
      %c0_108 = arith.constant 0 : index
      %c0_109 = arith.constant 0 : index
      %164 = vector.load %arg3[%c0_107, %c0_108, %c0_109] : memref<1x16x16xbf16, #tpu.memory_space<vmem>>, vector<1x16x16xbf16>
      %165 = vector.shape_cast %164 : vector<1x16x16xbf16> to vector<16x16xbf16>
      %c0_110 = arith.constant 0 : index
      %c0_111 = arith.constant 0 : index
      %166 = vector.load %arg6[%c0_110, %c0_111] : memref<16x32xbf16, #tpu.memory_space<vmem>>, vector<16x32xbf16>
      %cst_112 = arith.constant dense<0.000000e+00> : vector<16x32xf32>
      %167 = tpu.matmul %165, %166, %cst_112 {dimension_numbers = #tpu.dot_dimension_numbers<[1], [0], [0], [1], [0, 0, 1, 1], [], []>} : vector<16x16xbf16>, vector<16x32xbf16>, vector<16x32xf32> -> vector<16x32xf32>
      %c0_113 = arith.constant 0 : index
      %c0_114 = arith.constant 0 : index
      %c0_115 = arith.constant 0 : index
      %168 = vector.load %arg4[%c0_113, %c0_114, %c0_115] : memref<1x16x16xbf16, #tpu.memory_space<vmem>>, vector<1x16x16xbf16>
      %169 = vector.shape_cast %168 : vector<1x16x16xbf16> to vector<16x16xbf16>
      %c0_116 = arith.constant 0 : index
      %c0_117 = arith.constant 0 : index
      %170 = vector.load %arg7[%c0_116, %c0_117] : memref<16x32xbf16, #tpu.memory_space<vmem>>, vector<16x32xbf16>
      %cst_118 = arith.constant dense<0.000000e+00> : vector<16x32xf32>
      %171 = tpu.matmul %169, %170, %cst_118 {dimension_numbers = #tpu.dot_dimension_numbers<[1], [0], [0], [1], [0, 0, 1, 1], [], []>} : vector<16x16xbf16>, vector<16x32xbf16>, vector<16x32xf32> -> vector<16x32xf32>
      %172 = arith.truncf %167 : vector<16x32xf32> to vector<16x32xbf16>
      %c0_119 = arith.constant 0 : index
      %c0_120 = arith.constant 0 : index
      %173 = vector.load %arg12[%c0_119, %c0_120] : memref<16x32xbf16, #tpu.memory_space<vmem>>, vector<16x32xbf16>
      tpu.vector_store %arg12[%c0_119, %c0_120], %172 {strides = array<i32>} : memref<16x32xbf16, #tpu.memory_space<vmem>>, vector<16x32xbf16>,
      %174 = arith.truncf %171 : vector<16x32xf32> to vector<16x32xbf16>
      %c0_121 = arith.constant 0 : index
      %c0_122 = arith.constant 0 : index
      %175 = vector.load %arg13[%c0_121, %c0_122] : memref<16x32xbf16, #tpu.memory_space<vmem>>, vector<16x32xbf16>
      tpu.vector_store %arg13[%c0_121, %c0_122], %174 {strides = array<i32>} : memref<16x32xbf16, #tpu.memory_space<vmem>>, vector<16x32xbf16>,
    } else {
    }
    %c0 = arith.constant 0 : index
    %c0_1 = arith.constant 0 : index
    %c0_2 = arith.constant 0 : index
    %3 = vector.load %arg2[%c0, %c0_1, %c0_2] : memref<1x8x32xbf16, #tpu.memory_space<vmem>>, vector<1x8x32xbf16>
    %4 = vector.shape_cast %3 : vector<1x8x32xbf16> to vector<8x32xbf16>
    %c0_3 = arith.constant 0 : index
    %c0_4 = arith.constant 0 : index
    %5 = vector.load %arg5[%c0_3, %c0_4] : memref<32x32xbf16, #tpu.memory_space<vmem>>, vector<32x32xbf16>
    %cst = arith.constant dense<0.000000e+00> : vector<8x32xf32>
    %6 = tpu.matmul %4, %5, %cst {dimension_numbers = #tpu.dot_dimension_numbers<[1], [0], [0], [1], [0, 0, 1, 1], [], []>} : vector<8x32xbf16>, vector<32x32xbf16>, vector<8x32xf32> -> vector<8x32xf32>
    %cst_5 = arith.constant 5.000000e-01 : f32
    %7 = vector.broadcast %cst_5 : f32 to vector<8x32xf32>
    %8 = arith.mulf %6, %7 : vector<8x32xf32>
    %9 = arith.truncf %8 : vector<8x32xf32> to vector<8x32xbf16>
    %c0_6 = arith.constant 0 : index
    %c0_7 = arith.constant 0 : index
    %10 = vector.load %arg11[%c0_6, %c0_7] : memref<8x32xbf16, #tpu.memory_space<vmem>>, vector<8x32xbf16>
    tpu.vector_store %arg11[%c0_6, %c0_7], %9 {strides = array<i32>} : memref<8x32xbf16, #tpu.memory_space<vmem>>, vector<8x32xbf16>,
    %c0_8 = arith.constant 0 : index
    %c0_9 = arith.constant 0 : index
    %11 = vector.load %arg11[%c0_8, %c0_9] : memref<8x32xbf16, #tpu.memory_space<vmem>>, vector<8x4xbf16>
    %c0_10 = arith.constant 0 : index
    %c0_11 = arith.constant 0 : index
    %12 = vector.load %arg12[%c0_10, %c0_11] : memref<16x32xbf16, #tpu.memory_space<vmem>>, vector<16x4xbf16>
    %cst_12 = arith.constant dense<0.000000e+00> : vector<8x16xf32>
    %13 = tpu.matmul %11, %12, %cst_12 {dimension_numbers = #tpu.dot_dimension_numbers<[1], [1], [0], [0], [0, 0, 1, 0], [], []>} : vector<8x4xbf16>, vector<16x4xbf16>, vector<8x16xf32> -> vector<8x16xf32>
    %cst_13 = arith.constant dense<0xFF800000> : vector<8xf32>
    %14 = vector.multi_reduction <maximumf>, %13, %cst_13 [1] : vector<8x16xf32> to vector<8xf32>
    %15 = vector.shape_cast %14 : vector<8xf32> to vector<8x1xf32>
    %16 = vector.broadcast %15 : vector<8x1xf32> to vector<8x16xf32>
    %17 = arith.subf %13, %16 : vector<8x16xf32>
    %18 = math.exp %17 : vector<8x16xf32>
    %cst_14 = arith.constant dense<0.000000e+00> : vector<8xf32>
    %19 = vector.multi_reduction <add>, %18, %cst_14 [1] : vector<8x16xf32> to vector<8xf32>
    %20 = vector.shape_cast %19 : vector<8xf32> to vector<8x1xf32>
    %21 = tpu.reciprocal %20 {approx = true} : vector<8x1xf32> -> vector<8x1xf32>
    %22 = vector.broadcast %21 : vector<8x1xf32> to vector<8x16xf32>
    %23 = arith.mulf %18, %22 : vector<8x16xf32>
    %24 = arith.truncf %23 : vector<8x16xf32> to vector<8x16xbf16>
    %c0_15 = arith.constant 0 : index
    %c0_16 = arith.constant 0 : index
    %25 = vector.load %arg13[%c0_15, %c0_16] : memref<16x32xbf16, #tpu.memory_space<vmem>>, vector<16x4xbf16>
    %cst_17 = arith.constant dense<0.000000e+00> : vector<8x4xf32>
    %26 = tpu.matmul %24, %25, %cst_17 {dimension_numbers = #tpu.dot_dimension_numbers<[1], [0], [0], [1], [0, 0, 1, 1], [], []>} : vector<8x16xbf16>, vector<16x4xbf16>, vector<8x4xf32> -> vector<8x4xf32>
    %27 = arith.truncf %26 : vector<8x4xf32> to vector<8x4xbf16>
    %c0_18 = arith.constant 0 : index
    %c0_19 = arith.constant 0 : index
    %28 = vector.load %arg14[%c0_18, %c0_19] : memref<8x32xbf16, #tpu.memory_space<vmem>>, vector<8x4xbf16>
    tpu.vector_store %arg14[%c0_18, %c0_19], %27 {strides = array<i32>} : memref<8x32xbf16, #tpu.memory_space<vmem>>, vector<8x4xbf16>,
    %c0_20 = arith.constant 0 : index
    %c4 = arith.constant 4 : index
    %29 = vector.load %arg11[%c0_20, %c4] : memref<8x32xbf16, #tpu.memory_space<vmem>>, vector<8x4xbf16>
    %c0_21 = arith.constant 0 : index
    %c4_22 = arith.constant 4 : index
    %30 = vector.load %arg12[%c0_21, %c4_22] : memref<16x32xbf16, #tpu.memory_space<vmem>>, vector<16x4xbf16>
    %cst_23 = arith.constant dense<0.000000e+00> : vector<8x16xf32>
    %31 = tpu.matmul %29, %30, %cst_23 {dimension_numbers = #tpu.dot_dimension_numbers<[1], [1], [0], [0], [0, 0, 1, 0], [], []>} : vector<8x4xbf16>, vector<16x4xbf16>, vector<8x16xf32> -> vector<8x16xf32>
    %cst_24 = arith.constant dense<0xFF800000> : vector<8xf32>
    %32 = vector.multi_reduction <maximumf>, %31, %cst_24 [1] : vector<8x16xf32> to vector<8xf32>
    %33 = vector.shape_cast %32 : vector<8xf32> to vector<8x1xf32>
    %34 = vector.broadcast %33 : vector<8x1xf32> to vector<8x16xf32>
    %35 = arith.subf %31, %34 : vector<8x16xf32>
    %36 = math.exp %35 : vector<8x16xf32>
    %cst_25 = arith.constant dense<0.000000e+00> : vector<8xf32>
    %37 = vector.multi_reduction <add>, %36, %cst_25 [1] : vector<8x16xf32> to vector<8xf32>
    %38 = vector.shape_cast %37 : vector<8xf32> to vector<8x1xf32>
    %39 = tpu.reciprocal %38 {approx = true} : vector<8x1xf32> -> vector<8x1xf32>
    %40 = vector.broadcast %39 : vector<8x1xf32> to vector<8x16xf32>
    %41 = arith.mulf %36, %40 : vector<8x16xf32>
    %42 = arith.truncf %41 : vector<8x16xf32> to vector<8x16xbf16>
    %c0_26 = arith.constant 0 : index
    %c4_27 = arith.constant 4 : index
    %43 = vector.load %arg13[%c0_26, %c4_27] : memref<16x32xbf16, #tpu.memory_space<vmem>>, vector<16x4xbf16>
    %cst_28 = arith.constant dense<0.000000e+00> : vector<8x4xf32>
    %44 = tpu.matmul %42, %43, %cst_28 {dimension_numbers = #tpu.dot_dimension_numbers<[1], [0], [0], [1], [0, 0, 1, 1], [], []>} : vector<8x16xbf16>, vector<16x4xbf16>, vector<8x4xf32> -> vector<8x4xf32>
    %45 = arith.truncf %44 : vector<8x4xf32> to vector<8x4xbf16>
    %c0_29 = arith.constant 0 : index
    %c4_30 = arith.constant 4 : index
    %46 = vector.load %arg14[%c0_29, %c4_30] : memref<8x32xbf16, #tpu.memory_space<vmem>>, vector<8x4xbf16>
    tpu.vector_store %arg14[%c0_29, %c4_30], %45 {strides = array<i32>} : memref<8x32xbf16, #tpu.memory_space<vmem>>, vector<8x4xbf16>,
    %c0_31 = arith.constant 0 : index
    %c8 = arith.constant 8 : index
    %47 = vector.load %arg11[%c0_31, %c8] : memref<8x32xbf16, #tpu.memory_space<vmem>>, vector<8x4xbf16>
    %c0_32 = arith.constant 0 : index
    %c8_33 = arith.constant 8 : index
    %48 = vector.load %arg12[%c0_32, %c8_33] : memref<16x32xbf16, #tpu.memory_space<vmem>>, vector<16x4xbf16>
    %cst_34 = arith.constant dense<0.000000e+00> : vector<8x16xf32>
    %49 = tpu.matmul %47, %48, %cst_34 {dimension_numbers = #tpu.dot_dimension_numbers<[1], [1], [0], [0], [0, 0, 1, 0], [], []>} : vector<8x4xbf16>, vector<16x4xbf16>, vector<8x16xf32> -> vector<8x16xf32>
    %cst_35 = arith.constant dense<0xFF800000> : vector<8xf32>
    %50 = vector.multi_reduction <maximumf>, %49, %cst_35 [1] : vector<8x16xf32> to vector<8xf32>
    %51 = vector.shape_cast %50 : vector<8xf32> to vector<8x1xf32>
    %52 = vector.broadcast %51 : vector<8x1xf32> to vector<8x16xf32>
    %53 = arith.subf %49, %52 : vector<8x16xf32>
    %54 = math.exp %53 : vector<8x16xf32>
    %cst_36 = arith.constant dense<0.000000e+00> : vector<8xf32>
    %55 = vector.multi_reduction <add>, %54, %cst_36 [1] : vector<8x16xf32> to vector<8xf32>
    %56 = vector.shape_cast %55 : vector<8xf32> to vector<8x1xf32>
    %57 = tpu.reciprocal %56 {approx = true} : vector<8x1xf32> -> vector<8x1xf32>
    %58 = vector.broadcast %57 : vector<8x1xf32> to vector<8x16xf32>
    %59 = arith.mulf %54, %58 : vector<8x16xf32>
    %60 = arith.truncf %59 : vector<8x16xf32> to vector<8x16xbf16>
    %c0_37 = arith.constant 0 : index
    %c8_38 = arith.constant 8 : index
    %61 = vector.load %arg13[%c0_37, %c8_38] : memref<16x32xbf16, #tpu.memory_space<vmem>>, vector<16x4xbf16>
    %cst_39 = arith.constant dense<0.000000e+00> : vector<8x4xf32>
    %62 = tpu.matmul %60, %61, %cst_39 {dimension_numbers = #tpu.dot_dimension_numbers<[1], [0], [0], [1], [0, 0, 1, 1], [], []>} : vector<8x16xbf16>, vector<16x4xbf16>, vector<8x4xf32> -> vector<8x4xf32>
    %63 = arith.truncf %62 : vector<8x4xf32> to vector<8x4xbf16>
    %c0_40 = arith.constant 0 : index
    %c8_41 = arith.constant 8 : index
    %64 = vector.load %arg14[%c0_40, %c8_41] : memref<8x32xbf16, #tpu.memory_space<vmem>>, vector<8x4xbf16>
    tpu.vector_store %arg14[%c0_40, %c8_41], %63 {strides = array<i32>} : memref<8x32xbf16, #tpu.memory_space<vmem>>, vector<8x4xbf16>,
    %c0_42 = arith.constant 0 : index
    %c12 = arith.constant 12 : index
    %65 = vector.load %arg11[%c0_42, %c12] : memref<8x32xbf16, #tpu.memory_space<vmem>>, vector<8x4xbf16>
    %c0_43 = arith.constant 0 : index
    %c12_44 = arith.constant 12 : index
    %66 = vector.load %arg12[%c0_43, %c12_44] : memref<16x32xbf16, #tpu.memory_space<vmem>>, vector<16x4xbf16>
    %cst_45 = arith.constant dense<0.000000e+00> : vector<8x16xf32>
    %67 = tpu.matmul %65, %66, %cst_45 {dimension_numbers = #tpu.dot_dimension_numbers<[1], [1], [0], [0], [0, 0, 1, 0], [], []>} : vector<8x4xbf16>, vector<16x4xbf16>, vector<8x16xf32> -> vector<8x16xf32>
    %cst_46 = arith.constant dense<0xFF800000> : vector<8xf32>
    %68 = vector.multi_reduction <maximumf>, %67, %cst_46 [1] : vector<8x16xf32> to vector<8xf32>
    %69 = vector.shape_cast %68 : vector<8xf32> to vector<8x1xf32>
    %70 = vector.broadcast %69 : vector<8x1xf32> to vector<8x16xf32>
    %71 = arith.subf %67, %70 : vector<8x16xf32>
    %72 = math.exp %71 : vector<8x16xf32>
    %cst_47 = arith.constant dense<0.000000e+00> : vector<8xf32>
    %73 = vector.multi_reduction <add>, %72, %cst_47 [1] : vector<8x16xf32> to vector<8xf32>
    %74 = vector.shape_cast %73 : vector<8xf32> to vector<8x1xf32>
    %75 = tpu.reciprocal %74 {approx = true} : vector<8x1xf32> -> vector<8x1xf32>
    %76 = vector.broadcast %75 : vector<8x1xf32> to vector<8x16xf32>
    %77 = arith.mulf %72, %76 : vector<8x16xf32>
    %78 = arith.truncf %77 : vector<8x16xf32> to vector<8x16xbf16>
    %c0_48 = arith.constant 0 : index
    %c12_49 = arith.constant 12 : index
    %79 = vector.load %arg13[%c0_48, %c12_49] : memref<16x32xbf16, #tpu.memory_space<vmem>>, vector<16x4xbf16>
    %cst_50 = arith.constant dense<0.000000e+00> : vector<8x4xf32>
    %80 = tpu.matmul %78, %79, %cst_50 {dimension_numbers = #tpu.dot_dimension_numbers<[1], [0], [0], [1], [0, 0, 1, 1], [], []>} : vector<8x16xbf16>, vector<16x4xbf16>, vector<8x4xf32> -> vector<8x4xf32>
    %81 = arith.truncf %80 : vector<8x4xf32> to vector<8x4xbf16>
    %c0_51 = arith.constant 0 : index
    %c12_52 = arith.constant 12 : index
    %82 = vector.load %arg14[%c0_51, %c12_52] : memref<8x32xbf16, #tpu.memory_space<vmem>>, vector<8x4xbf16>
    tpu.vector_store %arg14[%c0_51, %c12_52], %81 {strides = array<i32>} : memref<8x32xbf16, #tpu.memory_space<vmem>>, vector<8x4xbf16>,
    %c0_53 = arith.constant 0 : index
    %c16 = arith.constant 16 : index
    %83 = vector.load %arg11[%c0_53, %c16] : memref<8x32xbf16, #tpu.memory_space<vmem>>, vector<8x4xbf16>
    %c0_54 = arith.constant 0 : index
    %c16_55 = arith.constant 16 : index
    %84 = vector.load %arg12[%c0_54, %c16_55] : memref<16x32xbf16, #tpu.memory_space<vmem>>, vector<16x4xbf16>
    %cst_56 = arith.constant dense<0.000000e+00> : vector<8x16xf32>
    %85 = tpu.matmul %83, %84, %cst_56 {dimension_numbers = #tpu.dot_dimension_numbers<[1], [1], [0], [0], [0, 0, 1, 0], [], []>} : vector<8x4xbf16>, vector<16x4xbf16>, vector<8x16xf32> -> vector<8x16xf32>
    %cst_57 = arith.constant dense<0xFF800000> : vector<8xf32>
    %86 = vector.multi_reduction <maximumf>, %85, %cst_57 [1] : vector<8x16xf32> to vector<8xf32>
    %87 = vector.shape_cast %86 : vector<8xf32> to vector<8x1xf32>
    %88 = vector.broadcast %87 : vector<8x1xf32> to vector<8x16xf32>
    %89 = arith.subf %85, %88 : vector<8x16xf32>
    %90 = math.exp %89 : vector<8x16xf32>
    %cst_58 = arith.constant dense<0.000000e+00> : vector<8xf32>
    %91 = vector.multi_reduction <add>, %90, %cst_58 [1] : vector<8x16xf32> to vector<8xf32>
    %92 = vector.shape_cast %91 : vector<8xf32> to vector<8x1xf32>
    %93 = tpu.reciprocal %92 {approx = true} : vector<8x1xf32> -> vector<8x1xf32>
    %94 = vector.broadcast %93 : vector<8x1xf32> to vector<8x16xf32>
    %95 = arith.mulf %90, %94 : vector<8x16xf32>
    %96 = arith.truncf %95 : vector<8x16xf32> to vector<8x16xbf16>
    %c0_59 = arith.constant 0 : index
    %c16_60 = arith.constant 16 : index
    %97 = vector.load %arg13[%c0_59, %c16_60] : memref<16x32xbf16, #tpu.memory_space<vmem>>, vector<16x4xbf16>
    %cst_61 = arith.constant dense<0.000000e+00> : vector<8x4xf32>
    %98 = tpu.matmul %96, %97, %cst_61 {dimension_numbers = #tpu.dot_dimension_numbers<[1], [0], [0], [1], [0, 0, 1, 1], [], []>} : vector<8x16xbf16>, vector<16x4xbf16>, vector<8x4xf32> -> vector<8x4xf32>
    %99 = arith.truncf %98 : vector<8x4xf32> to vector<8x4xbf16>
    %c0_62 = arith.constant 0 : index
    %c16_63 = arith.constant 16 : index
    %100 = vector.load %arg14[%c0_62, %c16_63] : memref<8x32xbf16, #tpu.memory_space<vmem>>, vector<8x4xbf16>
    tpu.vector_store %arg14[%c0_62, %c16_63], %99 {strides = array<i32>} : memref<8x32xbf16, #tpu.memory_space<vmem>>, vector<8x4xbf16>,
    %c0_64 = arith.constant 0 : index
    %c20 = arith.constant 20 : index
    %101 = vector.load %arg11[%c0_64, %c20] : memref<8x32xbf16, #tpu.memory_space<vmem>>, vector<8x4xbf16>
    %c0_65 = arith.constant 0 : index
    %c20_66 = arith.constant 20 : index
    %102 = vector.load %arg12[%c0_65, %c20_66] : memref<16x32xbf16, #tpu.memory_space<vmem>>, vector<16x4xbf16>
    %cst_67 = arith.constant dense<0.000000e+00> : vector<8x16xf32>
    %103 = tpu.matmul %101, %102, %cst_67 {dimension_numbers = #tpu.dot_dimension_numbers<[1], [1], [0], [0], [0, 0, 1, 0], [], []>} : vector<8x4xbf16>, vector<16x4xbf16>, vector<8x16xf32> -> vector<8x16xf32>
    %cst_68 = arith.constant dense<0xFF800000> : vector<8xf32>
    %104 = vector.multi_reduction <maximumf>, %103, %cst_68 [1] : vector<8x16xf32> to vector<8xf32>
    %105 = vector.shape_cast %104 : vector<8xf32> to vector<8x1xf32>
    %106 = vector.broadcast %105 : vector<8x1xf32> to vector<8x16xf32>
    %107 = arith.subf %103, %106 : vector<8x16xf32>
    %108 = math.exp %107 : vector<8x16xf32>
    %cst_69 = arith.constant dense<0.000000e+00> : vector<8xf32>
    %109 = vector.multi_reduction <add>, %108, %cst_69 [1] : vector<8x16xf32> to vector<8xf32>
    %110 = vector.shape_cast %109 : vector<8xf32> to vector<8x1xf32>
    %111 = tpu.reciprocal %110 {approx = true} : vector<8x1xf32> -> vector<8x1xf32>
    %112 = vector.broadcast %111 : vector<8x1xf32> to vector<8x16xf32>
    %113 = arith.mulf %108, %112 : vector<8x16xf32>
    %114 = arith.truncf %113 : vector<8x16xf32> to vector<8x16xbf16>
    %c0_70 = arith.constant 0 : index
    %c20_71 = arith.constant 20 : index
    %115 = vector.load %arg13[%c0_70, %c20_71] : memref<16x32xbf16, #tpu.memory_space<vmem>>, vector<16x4xbf16>
    %cst_72 = arith.constant dense<0.000000e+00> : vector<8x4xf32>
    %116 = tpu.matmul %114, %115, %cst_72 {dimension_numbers = #tpu.dot_dimension_numbers<[1], [0], [0], [1], [0, 0, 1, 1], [], []>} : vector<8x16xbf16>, vector<16x4xbf16>, vector<8x4xf32> -> vector<8x4xf32>
    %117 = arith.truncf %116 : vector<8x4xf32> to vector<8x4xbf16>
    %c0_73 = arith.constant 0 : index
    %c20_74 = arith.constant 20 : index
    %118 = vector.load %arg14[%c0_73, %c20_74] : memref<8x32xbf16, #tpu.memory_space<vmem>>, vector<8x4xbf16>
    tpu.vector_store %arg14[%c0_73, %c20_74], %117 {strides = array<i32>} : memref<8x32xbf16, #tpu.memory_space<vmem>>, vector<8x4xbf16>,
    %c0_75 = arith.constant 0 : index
    %c24 = arith.constant 24 : index
    %119 = vector.load %arg11[%c0_75, %c24] : memref<8x32xbf16, #tpu.memory_space<vmem>>, vector<8x4xbf16>
    %c0_76 = arith.constant 0 : index
    %c24_77 = arith.constant 24 : index
    %120 = vector.load %arg12[%c0_76, %c24_77] : memref<16x32xbf16, #tpu.memory_space<vmem>>, vector<16x4xbf16>
    %cst_78 = arith.constant dense<0.000000e+00> : vector<8x16xf32>
    %121 = tpu.matmul %119, %120, %cst_78 {dimension_numbers = #tpu.dot_dimension_numbers<[1], [1], [0], [0], [0, 0, 1, 0], [], []>} : vector<8x4xbf16>, vector<16x4xbf16>, vector<8x16xf32> -> vector<8x16xf32>
    %cst_79 = arith.constant dense<0xFF800000> : vector<8xf32>
    %122 = vector.multi_reduction <maximumf>, %121, %cst_79 [1] : vector<8x16xf32> to vector<8xf32>
    %123 = vector.shape_cast %122 : vector<8xf32> to vector<8x1xf32>
    %124 = vector.broadcast %123 : vector<8x1xf32> to vector<8x16xf32>
    %125 = arith.subf %121, %124 : vector<8x16xf32>
    %126 = math.exp %125 : vector<8x16xf32>
    %cst_80 = arith.constant dense<0.000000e+00> : vector<8xf32>
    %127 = vector.multi_reduction <add>, %126, %cst_80 [1] : vector<8x16xf32> to vector<8xf32>
    %128 = vector.shape_cast %127 : vector<8xf32> to vector<8x1xf32>
    %129 = tpu.reciprocal %128 {approx = true} : vector<8x1xf32> -> vector<8x1xf32>
    %130 = vector.broadcast %129 : vector<8x1xf32> to vector<8x16xf32>
    %131 = arith.mulf %126, %130 : vector<8x16xf32>
    %132 = arith.truncf %131 : vector<8x16xf32> to vector<8x16xbf16>
    %c0_81 = arith.constant 0 : index
    %c24_82 = arith.constant 24 : index
    %133 = vector.load %arg13[%c0_81, %c24_82] : memref<16x32xbf16, #tpu.memory_space<vmem>>, vector<16x4xbf16>
    %cst_83 = arith.constant dense<0.000000e+00> : vector<8x4xf32>
    %134 = tpu.matmul %132, %133, %cst_83 {dimension_numbers = #tpu.dot_dimension_numbers<[1], [0], [0], [1], [0, 0, 1, 1], [], []>} : vector<8x16xbf16>, vector<16x4xbf16>, vector<8x4xf32> -> vector<8x4xf32>
    %135 = arith.truncf %134 : vector<8x4xf32> to vector<8x4xbf16>
    %c0_84 = arith.constant 0 : index
    %c24_85 = arith.constant 24 : index
    %136 = vector.load %arg14[%c0_84, %c24_85] : memref<8x32xbf16, #tpu.memory_space<vmem>>, vector<8x4xbf16>
    tpu.vector_store %arg14[%c0_84, %c24_85], %135 {strides = array<i32>} : memref<8x32xbf16, #tpu.memory_space<vmem>>, vector<8x4xbf16>,
    %c0_86 = arith.constant 0 : index
    %c28 = arith.constant 28 : index
    %137 = vector.load %arg11[%c0_86, %c28] : memref<8x32xbf16, #tpu.memory_space<vmem>>, vector<8x4xbf16>
    %c0_87 = arith.constant 0 : index
    %c28_88 = arith.constant 28 : index
    %138 = vector.load %arg12[%c0_87, %c28_88] : memref<16x32xbf16, #tpu.memory_space<vmem>>, vector<16x4xbf16>
    %cst_89 = arith.constant dense<0.000000e+00> : vector<8x16xf32>
    %139 = tpu.matmul %137, %138, %cst_89 {dimension_numbers = #tpu.dot_dimension_numbers<[1], [1], [0], [0], [0, 0, 1, 0], [], []>} : vector<8x4xbf16>, vector<16x4xbf16>, vector<8x16xf32> -> vector<8x16xf32>
    %cst_90 = arith.constant dense<0xFF800000> : vector<8xf32>
    %140 = vector.multi_reduction <maximumf>, %139, %cst_90 [1] : vector<8x16xf32> to vector<8xf32>
    %141 = vector.shape_cast %140 : vector<8xf32> to vector<8x1xf32>
    %142 = vector.broadcast %141 : vector<8x1xf32> to vector<8x16xf32>
    %143 = arith.subf %139, %142 : vector<8x16xf32>
    %144 = math.exp %143 : vector<8x16xf32>
    %cst_91 = arith.constant dense<0.000000e+00> : vector<8xf32>
    %145 = vector.multi_reduction <add>, %144, %cst_91 [1] : vector<8x16xf32> to vector<8xf32>
    %146 = vector.shape_cast %145 : vector<8xf32> to vector<8x1xf32>
    %147 = tpu.reciprocal %146 {approx = true} : vector<8x1xf32> -> vector<8x1xf32>
    %148 = vector.broadcast %147 : vector<8x1xf32> to vector<8x16xf32>
    %149 = arith.mulf %144, %148 : vector<8x16xf32>
    %150 = arith.truncf %149 : vector<8x16xf32> to vector<8x16xbf16>
    %c0_92 = arith.constant 0 : index
    %c28_93 = arith.constant 28 : index
    %151 = vector.load %arg13[%c0_92, %c28_93] : memref<16x32xbf16, #tpu.memory_space<vmem>>, vector<16x4xbf16>
    %cst_94 = arith.constant dense<0.000000e+00> : vector<8x4xf32>
    %152 = tpu.matmul %150, %151, %cst_94 {dimension_numbers = #tpu.dot_dimension_numbers<[1], [0], [0], [1], [0, 0, 1, 1], [], []>} : vector<8x16xbf16>, vector<16x4xbf16>, vector<8x4xf32> -> vector<8x4xf32>
    %153 = arith.truncf %152 : vector<8x4xf32> to vector<8x4xbf16>
    %c0_95 = arith.constant 0 : index
    %c28_96 = arith.constant 28 : index
    %154 = vector.load %arg14[%c0_95, %c28_96] : memref<8x32xbf16, #tpu.memory_space<vmem>>, vector<8x4xbf16>
    tpu.vector_store %arg14[%c0_95, %c28_96], %153 {strides = array<i32>} : memref<8x32xbf16, #tpu.memory_space<vmem>>, vector<8x4xbf16>,
    %c0_97 = arith.constant 0 : index
    %c0_98 = arith.constant 0 : index
    %155 = vector.load %arg14[%c0_97, %c0_98] : memref<8x32xbf16, #tpu.memory_space<vmem>>, vector<8x32xbf16>
    %c0_99 = arith.constant 0 : index
    %c0_100 = arith.constant 0 : index
    %156 = vector.load %arg8[%c0_99, %c0_100] : memref<32x32xbf16, #tpu.memory_space<vmem>>, vector<32x32xbf16>
    %cst_101 = arith.constant dense<0.000000e+00> : vector<8x32xf32>
    %157 = tpu.matmul %155, %156, %cst_101 {dimension_numbers = #tpu.dot_dimension_numbers<[1], [0], [0], [1], [0, 0, 1, 1], [], []>} : vector<8x32xbf16>, vector<32x32xbf16>, vector<8x32xf32> -> vector<8x32xf32>
    %c0_102 = arith.constant 0 : index
    %c0_103 = arith.constant 0 : index
    %158 = vector.load %arg9[%c0_102, %c0_103] : memref<1x32xf32, #tpu.memory_space<vmem>>, vector<1x32xf32>
    %159 = vector.broadcast %158 : vector<1x32xf32> to vector<8x32xf32>
    %160 = arith.addf %157, %159 : vector<8x32xf32>
    %c0_104 = arith.constant 0 : index
    %c0_105 = arith.constant 0 : index
    %c0_106 = arith.constant 0 : index
    %161 = vector.load %arg10[%c0_104, %c0_105, %c0_106] : memref<1x8x32xf32, #tpu.memory_space<vmem>>, vector<1x8x32xf32>
    %162 = vector.shape_cast %161 : vector<1x8x32xf32> to vector<8x32xf32>
    %163 = vector.shape_cast %160 : vector<8x32xf32> to vector<1x8x32xf32>
    tpu.vector_store %arg10[%c0_104, %c0_105, %c0_106], %163 {strides = array<i32>} : memref<1x8x32xf32, #tpu.memory_space<vmem>>, vector<1x8x32xf32>,
    return
  }
  func.func @transform_0(%arg0: i32, %arg1: i32) -> (i32, i32, i32) {
    %c0_i32 = arith.constant 0 : i32
    %c0_i32_0 = arith.constant 0 : i32
    return %arg0, %arg1, %c0_i32 : i32, i32, i32
  }
  func.func @transform_1(%arg0: i32, %arg1: i32) -> (i32, i32, i32) {
    %c0_i32 = arith.constant 0 : i32
    %c0_i32_0 = arith.constant 0 : i32
    %c0_i32_1 = arith.constant 0 : i32
    return %arg0, %c0_i32, %c0_i32_0 : i32, i32, i32
  }
  func.func @transform_2(%arg0: i32, %arg1: i32) -> (i32, i32, i32) {
    %c0_i32 = arith.constant 0 : i32
    %c0_i32_0 = arith.constant 0 : i32
    %c0_i32_1 = arith.constant 0 : i32
    return %arg0, %c0_i32, %c0_i32_0 : i32, i32, i32
  }
  func.func @transform_3(%arg0: i32, %arg1: i32) -> (i32, i32) {
    %c0_i32 = arith.constant 0 : i32
    %c0_i32_0 = arith.constant 0 : i32
    %c0_i32_1 = arith.constant 0 : i32
    return %c0_i32, %c0_i32_0 : i32, i32
  }
  func.func @transform_4(%arg0: i32, %arg1: i32) -> (i32, i32) {
    %c0_i32 = arith.constant 0 : i32
    %c0_i32_0 = arith.constant 0 : i32
    %c0_i32_1 = arith.constant 0 : i32
    return %c0_i32, %c0_i32_0 : i32, i32
  }
  func.func @transform_5(%arg0: i32, %arg1: i32) -> (i32, i32) {
    %c0_i32 = arith.constant 0 : i32
    %c0_i32_0 = arith.constant 0 : i32
    %c0_i32_1 = arith.constant 0 : i32
    return %c0_i32, %c0_i32_0 : i32, i32
  }
  func.func @transform_6(%arg0: i32, %arg1: i32) -> (i32, i32) {
    %c0_i32 = arith.constant 0 : i32
    %c0_i32_0 = arith.constant 0 : i32
    %c0_i32_1 = arith.constant 0 : i32
    return %c0_i32, %c0_i32_0 : i32, i32
  }
  func.func @transform_7(%arg0: i32, %arg1: i32) -> (i32, i32) {
    %c0_i32 = arith.constant 0 : i32
    %c0_i32_0 = arith.constant 0 : i32
    %c0_i32_1 = arith.constant 0 : i32
    return %c0_i32, %c0_i32_0 : i32, i32
  }
  func.func @transform_8(%arg0: i32, %arg1: i32) -> (i32, i32, i32) {
    %c0_i32 = arith.constant 0 : i32
    %c0_i32_0 = arith.constant 0 : i32
    return %arg0, %arg1, %c0_i32 : i32, i32, i32
  }
}

</mosaic_0001>

<bundles_post_ra>
// kernel: attention_v2_forward.1
= control target key start
LH: loop header
LB: loop body
LE: loop exit
PB: predicated region body
PF: predicated region fallthrough
CT: control target
= control target key end

     0   :  { %13 = vsyncpa [#allocation7], 0  ;;  %s2518_s0 = inlined_call_operand.vmem [shape: bf16[2,8,32], index: 0, kind: input, shape index: {}]   ;;  %s2519_s1 = inlined_call_operand.vmem [shape: bf16[2,16,16], index: 1, kind: input, shape index: {}]   ;;  %s2520_s2 = inlined_call_operand.vmem [shape: bf16[2,16,16], index: 2, kind: input, shape index: {}]   ;;  %s2521_s3 = inlined_call_operand.vmem [shape: bf16[32,32], index: 3, kind: input, shape index: {}]   ;;  %s2522_s4 = inlined_call_operand.vmem [shape: bf16[16,32], index: 4, kind: input, shape index: {}]   ;;  %s2523_s5 = inlined_call_operand.vmem [shape: bf16[16,32], index: 5, kind: input, shape index: {}]   ;;  %s2524_s6 = inlined_call_operand.vmem [shape: bf16[32,32], index: 6, kind: input, shape index: {}]   ;;  %s2525_s7 = inlined_call_operand.vmem [shape: f32[1,32], index: 7, kind: input, shape index: {}]   ;;  %s2526_s8 = inlined_call_operand.hbm [shape: f32[2,8,32], index: 8, kind: output, shape index: {}]  }
   0x1   :  { %15 = vsyncpa [#allocation7 + $0x1], 0  ;;  %s2215_s27 = smov 0   ;;  %s2217_s28 = smov 0  }
   0x2   :  { %s2219_s29 = smov 0   ;;  %s2221_s30 = smov 0  }
   0x3   :  { %s2223_s9 = smov 0   ;;  %s2225_s10 = smov 0  }
   0x4 LB: > { %s1722_s11 = sadd.s32 4294967295, %s2151_s10   ;;  %s1723_s12 = sadd.s32 4294967294, %s2151_s10   ;;  %s2151_s10 = sphi %s2225_s10, %s21_s10   ;;  %s2147_s9 = sphi %s2223_s9, %s2533_s9   ;;  %s2143_s30 = sphi %s2221_s30, %s2532_s30   ;;  %s2139_s29 = sphi %s2219_s29, %s2531_s29   ;;  %s2135_s28 = sphi %s2217_s28, %s2530_s28   ;;  %s2131_s27 = sphi %s2215_s27, %s2529_s27  }
   0x5   : > { %s33_s13 = sadd.s32 1, %s2147_s9  ;;  %s227_s14 = sadd.s32 1, %s2139_s29 }
   0x6   : > { %p35_p0 = scmp.ge.s32.totalorder %s33_s13, 2  ;;  %p237_p1 = scmp.ne.s32.totalorder %s2139_s29, %s2135_s28 }
   0x7   : > { %p238_p2 = scmp.eq.s32.totalorder %s1722_s11, 1  ;;  %p243_p3 = scmp.ne.s32.totalorder %s2135_s28, %s2131_s27 }
   0x8   : > { %s2535_s13 = smov (%p35_p0, %s33_s13), 0  ;;  %p244_p5 = scmp.eq.s32.totalorder %s1723_s12, 1 }
   0x9   : > { %p2255_p4 = por %p238_p2, %p237_p1  ;;  %s222_s16 = ssub.s32 %s2147_s9, %s2535_s13 }
   0xa   : > { %p1726_p6 = scmp.ge.s32.totalorder %s2151_s10, 1  ;;  %p225_p7 = scmp.eq.s32.totalorder %s222_s16, 0 }
   0xb   : > { %p2262_p8 = por %p244_p5, %p243_p3  ;;  %p303_p9 = scmp.lt.s32.totalorder %s2151_s10, 3 }
   0xc   : > { %s2268_s18 = scalar_select %p225_p7, %s2139_s29, %s227_s14  }
   0xd   : > { %p304_p10 = pnand %p1726_p6, %p303_p9 }
   0xe   : > { %v2026_v0 = vld [vmem:[%s2522_s4] sm:$0xff] (!%p304_p10)   ;;  %v2153_v1 = vmov (!%p304_p10), 0.0   ;;  %p349_p11 = scmp.lt.s32.totalorder (!%p304_p10), %s2143_s30, 1  ;;  %vm2154_vm0 = vmmov (!%p304_p10), 0   ;;  %vm386_vm1 = vcmask (!%p304_p10), 130048   ;;  %v2029_v4 = vld [vmem:[%s2521_s3 + $0x8] sm:$0xff] (!%p304_p10)  }
   0xf   : > { %307 = sbr.rel (%p304_p10) target bundleno = 1554 (0x612), region = 52  ;;  %1831 = vmatprep.subr.bf16.mxu0 (!%p304_p10), %v2153_v1  ;;  %1837 = vmatprep.subr.bf16.mxu1 (!%p304_p10), %v2153_v1  ;;  %v2028_v2 = vld [vmem:[%s2521_s3] sm:$0xff] (!%p304_p10)   ;;  %vm491_vm2 = vcmask (!%p304_p10), 261120   ;;  %vm558_vm3 = vcmask (!%p304_p10), 257024   ;;  %vm562_vm4 = vcmask (!%p304_p10), 31744   ;;  %s2157_s14 = smov (!%p304_p10), 116  }
  0x10   : > { %1832 = vmatpush3.bf16.msra.mxu0 (!%p304_p10), %v2026_v0  ;;  %1833 = vmatprep.mubr.msk.bf16.mxu0 (!%p304_p10), %vm2154_vm0, %v2153_v1  ;;  %v2030_v6 = vld [vmem:[%s2523_s5] sm:$0xff] (!%p304_p10)   ;;  %s2158_s16 = smov (!%p304_p10), 112   ;;  %s2159_s19 = smov (!%p304_p10), 108   ;;  %vm667_vm5 = vcmask (!%p304_p10), 27648   ;;  %vm792_vm6 = vcmask (!%p304_p10), 60448   ;;  %vm917_vm7 = vcmask (!%p304_p10), 93248  }
  0x11   : > { %1843 = vmatprep.subr.bf16.mxu0 (!%p304_p10), %v2153_v1  ;;  %1839 = vmatprep.mubr.msk.bf16.mxu1 (!%p304_p10), %vm2154_vm0, %v2153_v1  ;;  %s2160_s20 = smov (!%p304_p10), 104   ;;  %s2163_s24 = smov (!%p304_p10), 8   ;;  %vm1042_vm8 = vcmask (!%p304_p10), 126048   ;;  %vm1167_vm9 = vcmask (!%p304_p10), 158848   ;;  %vm1292_vm10 = vcmask (!%p304_p10), 191648   ;;  %vm1417_vm11 = vcmask (!%p304_p10), 224448  }
  0x12   : > { %1838 = vmatpush3.bf16.msra.mxu1 (!%p304_p10), %v2030_v6  ;;  %s2165_s26 = smov (!%p304_p10), 16   ;;  %vm1542_vm12 = vcmask (!%p304_p10), 257248  }
  0x13   : > { %1851 = vmatprep.subr.bf16.mxu1 (!%p304_p10), %v2153_v1 }
  0x16   : > { %s350_s21 = scalar_select %p349_p11, %s2143_s30, 1 }
  0x18   : > { %s1780_s22 = sshll.u32 %s350_s21, 3  ;;  %s1728_s12 = sshll.u32 %s350_s21, 2 }
  0x19   : > { %s360_s25 = scalar_lea.vmem %s2519_s1, %s1780_s22  ;;  %s355_s23 = scalar_lea.vmem %s2518_s0, %s1728_s12 }
  0x1a   : > { %v2027_v3 = vld [vmem:[%s360_s25] sm:$0xff]   ;;  %s365_s11 = scalar_lea.vmem %s2520_s2, %s1780_s22  ;;  %s2155_s22 = smov 120  }
  0x1b   : > { %1834 = vmatmul.mubr.msk.bf16.vlgmr.msra.gmra.mrb[0].mxu0 %vm386_vm1, %v2027_v3  ;;  %v495_v5 = vld [vmem:[%s355_s23] sm:$0xf]  ;;  %s2156_s12 = smov 124   ;;  %s2161_s23 = smov 100  }
  0x1c   : > { %1844 = vmatpush3.bf16.msra.mxu0 %v2028_v2  ;;  %1847 = vmatprep.mubr.msk.bf16.mxu0 %vm2154_vm0, %v2153_v1  ;;  %v2031_v7 = vld [vmem:[%s365_s11] sm:$0xff]   ;;  %s2162_s21 = smov 4   ;;  %s2164_s25 = smov 12  }
  0x1d   : > { %1845 = vmatprep.subr.bf16.mxu0 %v2153_v1  ;;  %1840 = vmatmul.mubr.msk.bf16.vlgmr.msra.gmra.mrb[0].mxu1 %vm386_vm1, %v2031_v7  ;;  %s2166_s11 = smov 20  }
  0x1e   : > { %1853 = vmatprep.mubr.msk.bf16.mxu1 %vm2154_vm0, %v2153_v1 }
  0x20   : > { %1846 = vmatpush3.bf16.msra.mxu0 %v2029_v4 }
  0x21   : > { %1857 = vmatprep.subr.bf16.mxu0 %v2153_v1 }
  0x23   : > { %1848 = vmatmul.mubr.msk.bf16.vlgmr.msra.gmra.mrb[4].mxu0 %vm491_vm2, %v495_v5 }
  0x24   : > { %1859 = vmatprep.mubr.msk.bf16.mxu0 %vm2154_vm0, %v2153_v1 }
  0xee   : > { %v424_v8 = vpop.f32.mrb[0].mxu0 }
  0xef   : > { %v1835_v9 = vpop.f32.mrb[1].mxu0 }
  0xf0   : > { %v427_v10 = vpop.f32.mrb[2].mxu0  ;;  %v483_v29 = vpop.f32.mrb[0].mxu1 }
  0xf1   : > { %v490_v11 = vpack.c.bf16 %v427_v10, %v424_v8  ;;  %v1836_v12 = vpop.f32.mrb[3].mxu0  ;;  %v1841_v30 = vpop.f32.mrb[1].mxu1 }
  0xf2   : > { %v486_v31 = vpop.f32.mrb[2].mxu1 }
  0xf3   : > { %492 = vst.msk [vmem:[#allocation3] sm:$0xff] %vm491_vm2, %v490_v11  ;;  %v493_v32 = vpack.c.bf16 %v486_v31, %v483_v29  ;;  %v1842_v33 = vpop.f32.mrb[3].mxu1 }
  0xf5   : > { %494 = vst.msk [vmem:[#allocation4] sm:$0xff] %vm491_vm2, %v493_v32 }
  0xf6   : > { %v550_v13 = vpop.f32.mrb[4].mxu0 }
  0xf7   : > { %v556_v14 = vmul.f32 0.5, %v550_v13  ;;  %v1849_v15 = vpop.f32.mrb[5].mxu0 }
  0xf8   : > { %v553_v16 = vpop.f32.mrb[6].mxu0 }
  0xf9   : > { %v557_v17 = vpack.c.bf16 %v556_v14, %v556_v14  ;;  %v1850_v18 = vpop.f32.mrb[7].mxu0 }
  0xfa   : > { %v795_v19 = vld [vmem:[#allocation3] sm:$0xff] }
  0xfb   : > { %559 = vst.msk [vmem:[#allocation2] sm:$0xf] %vm558_vm3, %v557_v17  ;;  %802 = vrot.lane.b32.xlu1 %v795_v19, %s2155_s22  ;;  %677 = vrot.lane.b32.xlu0 %v795_v19, %s2156_s12  ;;  %v567_v20 = vsel %vm562_vm4, %v795_v19, 0 }
  0xfc   : > { %1852 = vmatpush3.bf16.xpose.msra.mxu1 %v567_v20  ;;  %v2333_v34 = vld [vmem:[#allocation4] sm:$0xff] }
  0xfd   : > { %1863 = vmatprep.subr.bf16.mxu1 %v2153_v1  ;;  %1858 = vmatpush3.bf16.msra.mxu0 %v2333_v34 }
  0xfe   : > { %1869 = vmatprep.subr.bf16.mxu0 %v2153_v1 }
 0x102   : > { %v560_v21 = vld [vmem:[#allocation2] sm:$0xf] }
 0x103   : > { %v2032_v22 = vld [vmem:[#allocation2] ss:$0 sps:$4 sm:$0xff]   ;;  %1854 = vmatmul.mubr.msk.bf16.vlgmr.msra.gmra.mrb[4].mxu1 %vm562_vm4, %v560_v21 }
 0x104   : > { %v2033_v23 = vld [vmem:[#allocation2] ss:$0 sps:$4 sm:$0xff]   ;;  %799 = vrot.lane.b32.xlu1 %v2032_v22, %s2155_s22  ;;  %1865 = vmatprep.mubr.msk.bf16.mxu1 %vm2154_vm0, %v2153_v1 }
 0x105   : > { %674 = vrot.lane.b32.xlu0 %v2033_v23, %s2156_s12  ;;  %v2034_v24 = vld [vmem:[#allocation2] ss:$0 sps:$4 sm:$0xff]  }
 0x106   : > { %v2035_v25 = vld [vmem:[#allocation2] ss:$0 sps:$4 sm:$0xff]  }
 0x107   : > { %v2036_v26 = vld [vmem:[#allocation2] ss:$0 sps:$4 sm:$0xff]  }
 0x108   : > { %924 = vrot.lane.b32.xlu1 %v2034_v24, %s2157_s14  ;;  %v2037_v27 = vld [vmem:[#allocation2] ss:$0 sps:$4 sm:$0xff]  }
 0x109   : > { %927 = vrot.lane.b32.xlu0 %v795_v19, %s2157_s14  ;;  %v2038_v28 = vld [vmem:[#allocation2] ss:$0 sps:$4 sm:$0xff]  }
 0x10c   : > { %1049 = vrot.lane.b32.xlu1 %v2035_v25, %s2158_s16 }
 0x10d   : > { %1052 = vrot.lane.b32.xlu0 %v795_v19, %s2158_s16 }
 0x110   : > { %1174 = vrot.lane.b32.xlu1 %v2036_v26, %s2159_s19 }
 0x111   : > { %1177 = vrot.lane.b32.xlu0 %v795_v19, %s2159_s19 }
 0x114   : > { %1299 = vrot.lane.b32.xlu1 %v2037_v27, %s2160_s20 }
 0x115   : > { %1302 = vrot.lane.b32.xlu0 %v795_v19, %s2160_s20 }
 0x118   : > { %1424 = vrot.lane.b32.xlu1 %v2038_v28, %s2161_s23 }
 0x119   : > { %1427 = vrot.lane.b32.xlu0 %v795_v19, %s2161_s23 }
 0x16d   : > { %v678_v35 = vpop.permute.xlu0 %677  ;;  %v803_v37 = vpop.permute.xlu1 %802 }
 0x16e   : > { %v683_v36 = vsel %vm562_vm4, %v678_v35, 0  ;;  %v808_v39 = vsel %vm562_vm4, %v803_v37, 0 }
 0x16f   : > { %1864 = vmatpush3.bf16.xpose.msra.mxu1 %v683_v36 }
 0x170   : > { %1875 = vmatprep.subr.bf16.mxu1 %v2153_v1 }
 0x176   : > { %v800_v41 = vpop.permute.xlu1 %799 }
 0x177   : > { %v675_v38 = vpop.permute.xlu0 %674 }
 0x178   : > { %1866 = vmatmul.mubr.msk.bf16.vlgmr.msra.gmra.mrb[8].mxu1 %vm562_vm4, %v675_v38 }
 0x179   : > { %1876 = vmatpush3.bf16.xpose.msra.mxu1 %v808_v39  ;;  %1877 = vmatprep.mubr.msk.bf16.mxu1 %vm2154_vm0, %v2153_v1 }
 0x17a   : > { %1887 = vmatprep.subr.bf16.mxu1 %v2153_v1  ;;  %v925_v44 = vpop.permute.xlu1 %924 }
 0x17b   : > { %v928_v40 = vpop.permute.xlu0 %927 }
 0x17c   : > { %v933_v42 = vsel %vm562_vm4, %v928_v40, 0 }
 0x17e   : > { %v1050_v47 = vpop.permute.xlu1 %1049 }
 0x17f   : > { %v1053_v43 = vpop.permute.xlu0 %1052 }
 0x180   : > { %1878 = vmatmul.mubr.msk.bf16.vlgmr.msra.gmra.mrb[12].mxu1 %vm562_vm4, %v800_v41  ;;  %v1058_v45 = vsel %vm562_vm4, %v1053_v43, 0 }
 0x181   : > { %1888 = vmatpush3.bf16.xpose.msra.mxu1 %v933_v42  ;;  %1889 = vmatprep.mubr.msk.bf16.mxu1 %vm2154_vm0, %v2153_v1 }
 0x182   : > { %1899 = vmatprep.subr.bf16.mxu1 %v2153_v1  ;;  %v1175_v50 = vpop.permute.xlu1 %1174 }
 0x183   : > { %v1178_v46 = vpop.permute.xlu0 %1177 }
 0x184   : > { %v1183_v48 = vsel %vm562_vm4, %v1178_v46, 0 }
 0x186   : > { %v1300_v53 = vpop.permute.xlu1 %1299 }
 0x187   : > { %v1303_v49 = vpop.permute.xlu0 %1302 }
 0x188   : > { %1890 = vmatmul.mubr.msk.bf16.vlgmr.msra.gmra.mrb[16].mxu1 %vm562_vm4, %v925_v44  ;;  %v1308_v51 = vsel %vm562_vm4, %v1303_v49, 0 }
 0x189   : > { %1900 = vmatpush3.bf16.xpose.msra.mxu1 %v1058_v45  ;;  %1901 = vmatprep.mubr.msk.bf16.mxu1 %vm2154_vm0, %v2153_v1 }
 0x18a   : > { %1911 = vmatprep.subr.bf16.mxu1 %v2153_v1  ;;  %v1425_v55 = vpop.permute.xlu1 %1424 }
 0x18b   : > { %v1428_v52 = vpop.permute.xlu0 %1427 }
 0x18c   : > { %v1433_v54 = vsel %vm562_vm4, %v1428_v52, 0 }
 0x190   : > { %1902 = vmatmul.mubr.msk.bf16.vlgmr.msra.gmra.mrb[20].mxu1 %vm562_vm4, %v1050_v47 }
 0x191   : > { %1912 = vmatpush3.bf16.xpose.msra.mxu1 %v1183_v48  ;;  %1913 = vmatprep.mubr.msk.bf16.mxu1 %vm2154_vm0, %v2153_v1 }
 0x192   : > { %1923 = vmatprep.subr.bf16.mxu1 %v2153_v1 }
 0x198   : > { %1914 = vmatmul.mubr.msk.bf16.vlgmr.msra.gmra.mrb[24].mxu1 %vm562_vm4, %v1175_v50 }
 0x199   : > { %1924 = vmatpush3.bf16.xpose.msra.mxu1 %v1308_v51  ;;  %1925 = vmatprep.mubr.msk.bf16.mxu1 %vm2154_vm0, %v2153_v1 }
 0x19a   : > { %1935 = vmatprep.subr.bf16.mxu1 %v2153_v1 }
 0x1a0   : > { %1926 = vmatmul.mubr.msk.bf16.vlgmr.msra.gmra.mrb[28].mxu1 %vm562_vm4, %v1300_v53 }
 0x1a1   : > { %1936 = vmatpush3.bf16.xpose.msra.mxu1 %v1433_v54  ;;  %1937 = vmatprep.mubr.msk.bf16.mxu1 %vm2154_vm0, %v2153_v1 }
 0x1a2   : > { %1947 = vmatprep.subr.bf16.mxu1 %v2153_v1 }
 0x1a8   : > { %1938 = vmatmul.mubr.msk.bf16.vlgmr.msra.gmra.mrb[32].mxu1 %vm562_vm4, %v1425_v55 }
 0x1a9   : > { %1951 = vmatprep.mubr.msk.bf16.mxu1 %vm2154_vm0, %v2153_v1 }
 0x1d6   : > { %v603_v56 = vpop.f32.mrb[4].mxu1 }
 0x1d7   : > { %v1855_v57 = vpop.f32.mrb[5].mxu1  ;;  %v610_v58 = vsel %vm386_vm1, %v603_v56, -inf }
 0x1d8   : > { %611 = vmax.xlane.f32.xlu0 %v610_v58  ;;  %v606_v59 = vpop.f32.mrb[6].mxu1 }
 0x1d9   : > { %v1856_v60 = vpop.f32.mrb[7].mxu1 }
 0x24b   : > { %v719_v61 = vpop.f32.mrb[8].mxu1 }
 0x24c   : > { %v1867_v62 = vpop.f32.mrb[9].mxu1  ;;  %v725_v63 = vsel %vm386_vm1, %v719_v61, -inf }
 0x24d   : > { %726 = vmax.xlane.f32.xlu1 %v725_v63  ;;  %v722_v0 = vpop.f32.mrb[10].mxu1 }
 0x24e   : > { %v1868_v2 = vpop.f32.mrb[11].mxu1 }
 0x253   : > { %v844_v3 = vpop.f32.mrb[12].mxu1 }
 0x254   : > { %v1879_v4 = vpop.f32.mrb[13].mxu1  ;;  %v850_v5 = vsel %vm386_vm1, %v844_v3, -inf }
 0x255   : > { %851 = vmax.xlane.f32.xlu0 %v850_v5  ;;  %v847_v6 = vpop.f32.mrb[14].mxu1 }
 0x256   : > { %v1880_v7 = vpop.f32.mrb[15].mxu1 }
 0x25b   : > { %v969_v8 = vpop.f32.mrb[16].mxu1 }
 0x25c   : > { %v1891_v9 = vpop.f32.mrb[17].mxu1  ;;  %v975_v10 = vsel %vm386_vm1, %v969_v8, -inf }
 0x25d   : > { %976 = vmax.xlane.f32.xlu0 %v975_v10  ;;  %v972_v11 = vpop.f32.mrb[18].mxu1 }
 0x25e   : > { %v1892_v12 = vpop.f32.mrb[19].mxu1 }
 0x263   : > { %v2376_v13 = vpop.f32.mrb[20].mxu1 }
 0x264   : > { %v1903_v14 = vpop.f32.mrb[21].mxu1  ;;  %v1100_v15 = vsel %vm386_vm1, %v2376_v13, -inf }
 0x265   : > { %v612_v16 = vpop.xlane.xlu0 %611  ;;  %1101 = vmax.xlane.f32.xlu1 %v1100_v15  ;;  %v1097_v17 = vpop.f32.mrb[22].mxu1 }
 0x266   : > { %v613_v18 = vsub.f32 %v603_v56, %v612_v16  ;;  %v1904_v19 = vpop.f32.mrb[23].mxu1 }
 0x268   : > { %v614_v20 = vmul.f32 1.442695, %v613_v18 }
 0x26a   : > { %2041 = vpow2.f32 %v614_v20 }
 0x26b   : > { %v2380_v21 = vpop.f32.mrb[24].mxu1 }
 0x26c   : > { %v1915_v22 = vpop.f32.mrb[25].mxu1  ;;  %v1225_v23 = vsel %vm386_vm1, %v2380_v21, -inf }
 0x26d   : > { %1226 = vmax.xlane.f32.xlu0 %v1225_v23  ;;  %v1222_v24 = vpop.f32.mrb[26].mxu1 }
 0x26e   : > { %v1916_v25 = vpop.f32.mrb[27].mxu1 }
 0x273   : > { %v1344_v26 = vpop.f32.mrb[28].mxu1 }
 0x274   : > { %v1927_v27 = vpop.f32.mrb[29].mxu1  ;;  %v1350_v28 = vsel %vm386_vm1, %v1344_v26, -inf  ;;  %v2042_v29 = vpop.eup %2041 }
 0x275   : > { %1351 = vmax.xlane.f32.xlu1 %v1350_v28  ;;  %v1347_v30 = vpop.f32.mrb[30].mxu1  ;;  %v616_v32 = vsel %vm386_vm1, %v2042_v29, 0.0 }
 0x276   : > { %v1928_v31 = vpop.f32.mrb[31].mxu1 }
 0x279   : > { %617 = vadd.xlane.f32.xlu1 %v616_v32 }
 0x27b   : > { %v1469_v33 = vpop.f32.mrb[32].mxu1 }
 0x27c   : > { %v1939_v35 = vpop.f32.mrb[33].mxu1  ;;  %v1475_v36 = vsel %vm386_vm1, %v1469_v33, -inf }
 0x27d   : > { %1476 = vmax.xlane.f32.xlu0 %v1475_v36  ;;  %v1472_v37 = vpop.f32.mrb[34].mxu1 }
 0x27e   : > { %v1940_v38 = vpop.f32.mrb[35].mxu1 }
 0x28a   : > { %864 = vrot.lane.b32.xlu1 %v2333_v34, %s2155_s22 }
 0x293   : > { %739 = vrot.lane.b32.xlu0 %v2333_v34, %s2156_s12 }
 0x2da   : > { %v727_v39 = vpop.xlane.xlu1 %726 }
 0x2db   : > { %v728_v40 = vsub.f32 %v719_v61, %v727_v39 }
 0x2dd   : > { %v729_v41 = vmul.f32 1.442695, %v728_v40 }
 0x2df   : > { %2043 = vpow2.f32 %v729_v41 }
 0x2e2   : > { %v852_v42 = vpop.xlane.xlu0 %851 }
 0x2e3   : > { %v853_v43 = vsub.f32 %v844_v3, %v852_v42 }
 0x2e5   : > { %v854_v44 = vmul.f32 1.442695, %v853_v43 }
 0x2e7   : > { %2045 = vpow2.f32 %v854_v44 }
 0x2e9   : > { %v2044_v45 = vpop.eup %2043 }
 0x2ea   : > { %v977_v46 = vpop.xlane.xlu0 %976  ;;  %v731_v47 = vsel %vm386_vm1, %v2044_v45, 0.0 }
 0x2eb   : > { %v978_v48 = vsub.f32 %v969_v8, %v977_v46  ;;  %732 = vadd.xlane.f32.xlu0 %v731_v47 }
 0x2ed   : > { %v979_v49 = vmul.f32 1.442695, %v978_v48 }
 0x2ef   : > { %2047 = vpow2.f32 %v979_v49 }
 0x2f1   : > { %v2392_v50 = vpop.eup %2045 }
 0x2f2   : > { %v856_v51 = vsel %vm386_vm1, %v2392_v50, 0.0  ;;  %v1102_v54 = vpop.xlane.xlu1 %1101 }
 0x2f3   : > { %857 = vadd.xlane.f32.xlu1 %v856_v51  ;;  %v1103_v60 = vsub.f32 %v2376_v13, %v1102_v54 }
 0x2f5   : > { %v1104_v63 = vmul.f32 1.442695, %v1103_v60 }
 0x2f9   : > { %v2396_v52 = vpop.eup %2047 }
 0x2fa   : > { %v981_v53 = vsel %vm386_vm1, %v2396_v52, 0.0  ;;  %v1227_v57 = vpop.xlane.xlu0 %1226 }
 0x2fb   : > { %982 = vadd.xlane.f32.xlu0 %v981_v53  ;;  %v1228_v0 = vsub.f32 %v2380_v21, %v1227_v57 }
 0x2fd   : > { %v1229_v4 = vmul.f32 1.442695, %v1228_v0 }
 0x302   : > { %v1352_v55 = vpop.xlane.xlu1 %1351 }
 0x303   : > { %v1353_v3 = vsub.f32 %v1344_v26, %v1352_v55 }
 0x304   : > { %989 = vrot.lane.b32.xlu1 %v2333_v34, %s2157_s14 }
 0x305   : > { %v1354_v6 = vmul.f32 1.442695, %v1353_v3 }
 0x306   : > { %v618_v56 = vpop.xlane.xlu1 %617 }
 0x307   : > { %2049 = vrcp.f32 %v618_v56 }
 0x308   : > { %2051 = vpow2.f32 %v1104_v63 }
 0x309   : > { %2053 = vpow2.f32 %v1229_v4 }
 0x30a   : > { %v1477_v58 = vpop.xlane.xlu0 %1476  ;;  %2055 = vpow2.f32 %v1354_v6  ;;  %v865_v17 = vpop.permute.xlu1 %864 }
 0x30b   : > { %v1478_v5 = vsub.f32 %v1469_v33, %v1477_v58 }
 0x30d   : > { %v1479_v7 = vmul.f32 1.442695, %v1478_v5 }
 0x30e   : > { %v740_v2 = vpop.permute.xlu0 %739 }
 0x30f   : > { %2057 = vpow2.f32 %v1479_v7 }
 0x311   : > { %1114 = vrot.lane.b32.xlu0 %v2333_v34, %s2158_s16  ;;  %v2050_v59 = vpop.eup %2049 }
 0x312   : > { %v620_v61 = vmul.f32 %v2050_v59, %v2042_v29  ;;  %v2052_v8 = vpop.eup %2051 }
 0x313   : > { %v1106_v9 = vsel %vm386_vm1, %v2052_v8, 0.0  ;;  %v2054_v10 = vpop.eup %2053 }
 0x314   : > { %v621_v62 = vpack.c.bf16 %v620_v61, %v620_v61  ;;  %v2411_v11 = vpop.eup %2055  ;;  %v1231_v12 = vsel %vm386_vm1, %v2054_v10, 0.0 }
 0x315   : > { %v1356_v14 = vsel %vm386_vm1, %v2411_v11, 0.0 }
 0x316   : > { %1860 = vmatmul.mubr.msk.bf16.vlgmr.msra.gmra.mrb[8].mxu0 %vm386_vm1, %v621_v62 }
 0x317   : > { %1870 = vmatpush3.bf16.msra.mxu0 %v740_v2  ;;  %1871 = vmatprep.mubr.msk.bf16.mxu0 %vm2154_vm0, %v2153_v1 }
 0x318   : > { %1881 = vmatprep.subr.bf16.mxu0 %v2153_v1 }
 0x319   : > { %v2414_v13 = vpop.eup %2057 }
 0x31a   : > { %v1481_v15 = vsel %vm386_vm1, %v2414_v13, 0.0 }
 0x328   : > { %1107 = vadd.xlane.f32.xlu1 %v1106_v9 }
 0x32c   : > { %1232 = vadd.xlane.f32.xlu1 %v1231_v12 }
 0x330   : > { %1357 = vadd.xlane.f32.xlu0 %v1356_v14  ;;  %1482 = vadd.xlane.f32.xlu1 %v1481_v15 }
 0x341   : > { %1239 = vrot.lane.b32.xlu1 %v2333_v34, %s2159_s19  ;;  %s2167_s19 = smov 24  }
 0x346   : > { %1364 = vrot.lane.b32.xlu0 %v2333_v34, %s2160_s20  ;;  %s2168_s20 = smov 28  }
 0x34a   : > { %1489 = vrot.lane.b32.xlu0 %v2333_v34, %s2161_s23  ;;  %s346_s23 = sand.u32 1, %s2135_s28  }
 0x378   : > { %v733_v16 = vpop.xlane.xlu0 %732 }
 0x379   : > { %2059 = vrcp.f32 %v733_v16 }
 0x380   : > { %v858_v18 = vpop.xlane.xlu1 %857 }
 0x381   : > { %2061 = vrcp.f32 %v858_v18 }
 0x383   : > { %v2060_v19 = vpop.eup %2059 }
 0x384   : > { %v735_v20 = vmul.f32 %v2060_v19, %v2044_v45  ;;  %v990_v25 = vpop.permute.xlu1 %989  ;;  %v2040_v19 = vld [vmem:[%s2524_s6 + $0x8] sm:$0xff]  }
 0x386   : > { %v736_v21 = vpack.c.bf16 %v735_v20, %v735_v20 }
 0x388   : > { %1872 = vmatmul.mubr.msk.bf16.vlgmr.msra.gmra.mrb[12].mxu0 %vm386_vm1, %v736_v21  ;;  %v983_v22 = vpop.xlane.xlu0 %982 }
 0x389   : > { %1882 = vmatpush3.bf16.msra.mxu0 %v865_v17  ;;  %2063 = vrcp.f32 %v983_v22  ;;  %1883 = vmatprep.mubr.msk.bf16.mxu0 %vm2154_vm0, %v2153_v1  ;;  %v2039_v17 = vld [vmem:[%s2524_s6] sm:$0xff]  }
 0x38a   : > { %1893 = vmatprep.subr.bf16.mxu0 %v2153_v1  ;;  %1948 = vmatpush3.bf16.msra.mxu1 %v2039_v17 }
 0x38b   : > { %v2062_v23 = vpop.eup %2061  ;;  %1949 = vmatprep.subr.bf16.mxu1 %v2153_v1 }
 0x38c   : > { %v860_v34 = vmul.f32 %v2062_v23, %v2392_v50  ;;  %v1115_v29 = vpop.permute.xlu0 %1114 }
 0x38e   : > { %v861_v24 = vpack.c.bf16 %v860_v34, %v860_v34  ;;  %1950 = vmatpush3.bf16.msra.mxu1 %v2040_v19 }
 0x390   : > { %1884 = vmatmul.mubr.msk.bf16.vlgmr.msra.gmra.mrb[16].mxu0 %vm386_vm1, %v861_v24 }
 0x391   : > { %1894 = vmatpush3.bf16.msra.mxu0 %v990_v25  ;;  %1895 = vmatprep.mubr.msk.bf16.mxu0 %vm2154_vm0, %v2153_v1 }
 0x392   : > { %1905 = vmatprep.subr.bf16.mxu0 %v2153_v1 }
 0x393   : > { %v2064_v26 = vpop.eup %2063 }
 0x394   : > { %v985_v27 = vmul.f32 %v2064_v26, %v2396_v52 }
 0x396   : > { %v986_v28 = vpack.c.bf16 %v985_v27, %v985_v27 }
 0x398   : > { %1896 = vmatmul.mubr.msk.bf16.vlgmr.msra.gmra.mrb[20].mxu0 %vm386_vm1, %v986_v28 }
 0x399   : > { %1906 = vmatpush3.bf16.msra.mxu0 %v1115_v29  ;;  %1907 = vmatprep.mubr.msk.bf16.mxu0 %vm2154_vm0, %v2153_v1 }
 0x39a   : > { %1917 = vmatprep.subr.bf16.mxu0 %v2153_v1 }
 0x3b5   : > { %v1108_v30 = vpop.xlane.xlu1 %1107 }
 0x3b6   : > { %2065 = vrcp.f32 %v1108_v30 }
 0x3b9   : > { %v1233_v31 = vpop.xlane.xlu1 %1232 }
 0x3ba   : > { %2067 = vrcp.f32 %v1233_v31 }
 0x3bd   : > { %v1483_v32 = vpop.xlane.xlu1 %1482  ;;  %v1358_v33 = vpop.xlane.xlu0 %1357 }
 0x3be   : > { %2069 = vrcp.f32 %v1358_v33 }
 0x3bf   : > { %2071 = vrcp.f32 %v1483_v32 }
 0x3c0   : > { %v2066_v35 = vpop.eup %2065 }
 0x3c1   : > { %v1110_v36 = vmul.f32 %v2066_v35, %v2052_v8  ;;  %v1240_v39 = vpop.permute.xlu1 %1239  ;;  %v1365_v43 = vpop.permute.xlu0 %1364 }
 0x3c3   : > { %v1111_v37 = vpack.c.bf16 %v1110_v36, %v1110_v36  ;;  %v1772_v36 = vld [vmem:[%s2525_s7] ss:$0 sm:$0xff] }
 0x3c4   : > { %v2068_v38 = vpop.eup %2067 }
 0x3c5   : > { %1908 = vmatmul.mubr.msk.bf16.vlgmr.msra.gmra.mrb[24].mxu0 %vm386_vm1, %v1111_v37  ;;  %v1235_v40 = vmul.f32 %v2068_v38, %v2054_v10  ;;  %v1490_v47 = vpop.permute.xlu0 %1489 }
 0x3c6   : > { %1918 = vmatpush3.bf16.msra.mxu0 %v1240_v39  ;;  %1919 = vmatprep.mubr.msk.bf16.mxu0 %vm2154_vm0, %v2153_v1 }
 0x3c7   : > { %1929 = vmatprep.subr.bf16.mxu0 %v2153_v1  ;;  %v1236_v41 = vpack.c.bf16 %v1235_v40, %v1235_v40 }
 0x3c8   : > { %v2070_v42 = vpop.eup %2069 }
 0x3c9   : > { %v1360_v44 = vmul.f32 %v2070_v42, %v2411_v11  ;;  %v2072_v46 = vpop.eup %2071 }
 0x3ca   : > { %v1485_v48 = vmul.f32 %v2072_v46, %v2414_v13 }
 0x3cb   : > { %v1361_v45 = vpack.c.bf16 %v1360_v44, %v1360_v44 }
 0x3cc   : > { %v1486_v49 = vpack.c.bf16 %v1485_v48, %v1485_v48 }
 0x3cd   : > { %1920 = vmatmul.mubr.msk.bf16.vlgmr.msra.gmra.mrb[28].mxu0 %vm386_vm1, %v1236_v41 }
 0x3ce   : > { %1930 = vmatpush3.bf16.msra.mxu0 %v1365_v43  ;;  %1931 = vmatprep.mubr.msk.bf16.mxu0 %vm2154_vm0, %v2153_v1 }
 0x3cf   : > { %1941 = vmatprep.subr.bf16.mxu0 %v2153_v1 }
 0x3d5   : > { %1932 = vmatmul.mubr.msk.bf16.vlgmr.msra.gmra.mrb[32].mxu0 %vm386_vm1, %v1361_v45 }
 0x3d6   : > { %1942 = vmatpush3.bf16.msra.mxu0 %v1490_v47  ;;  %1943 = vmatprep.mubr.msk.bf16.mxu0 %vm2154_vm0, %v2153_v1 }
 0x3dd   : > { %1944 = vmatmul.mubr.msk.bf16.vlgmr.msra.gmra.mrb[36].mxu0 %vm386_vm1, %v1486_v49 }
 0x3e9   : > { %v660_v50 = vpop.f32.mrb[8].mxu0 }
 0x3ea   : > { %v666_v51 = vpack.c.bf16 %v660_v50, %v660_v50  ;;  %v1861_v52 = vpop.f32.mrb[9].mxu0 }
 0x3eb   : > { %v663_v53 = vpop.f32.mrb[10].mxu0 }
 0x3ec   : > { %668 = vst.msk [vmem:[#allocation5] sm:$0xf] %vm667_vm5, %v666_v51  ;;  %v1862_v54 = vpop.f32.mrb[11].mxu0 }
 0x45b   : > { %v779_v55 = vpop.f32.mrb[12].mxu0 }
 0x45c   : > { %v1782_v56 = vpack.c.bf16 %v779_v55, %v779_v55  ;;  %v1873_v57 = vpop.f32.mrb[13].mxu0 }
 0x45d   : > { %v782_v58 = vpop.f32.mrb[14].mxu0 }
 0x45e   : > { %789 = vrot.lane.b32.xlu1 %v1782_v56, %s2162_s21  ;;  %v1874_v59 = vpop.f32.mrb[15].mxu0  ;;  %s1727_s21 = sshll.u32 %s346_s23, 3 }
 0x463   : > { %v904_v60 = vpop.f32.mrb[16].mxu0 }
 0x464   : > { %v1783_v61 = vpack.c.bf16 %v904_v60, %v904_v60  ;;  %v1885_v62 = vpop.f32.mrb[17].mxu0 }
 0x465   : > { %v907_v63 = vpop.f32.mrb[18].mxu0 }
 0x466   : > { %914 = vrot.lane.b32.xlu0 %v1783_v61, %s2163_s24  ;;  %v1886_v0 = vpop.f32.mrb[19].mxu0 }
 0x46b   : > { %v1029_v2 = vpop.f32.mrb[20].mxu0 }
 0x46c   : > { %v1784_v3 = vpack.c.bf16 %v1029_v2, %v1029_v2  ;;  %v1897_v4 = vpop.f32.mrb[21].mxu0 }
 0x46d   : > { %v1032_v5 = vpop.f32.mrb[22].mxu0 }
 0x46e   : > { %1039 = vrot.lane.b32.xlu1 %v1784_v3, %s2164_s25  ;;  %v1898_v6 = vpop.f32.mrb[23].mxu0 }
 0x498   : > { %v1154_v7 = vpop.f32.mrb[24].mxu0 }
 0x499   : > { %v1785_v8 = vpack.c.bf16 %v1154_v7, %v1154_v7  ;;  %v1909_v9 = vpop.f32.mrb[25].mxu0 }
 0x49a   : > { %v1157_v10 = vpop.f32.mrb[26].mxu0 }
 0x49b   : > { %1164 = vrot.lane.b32.xlu0 %v1785_v8, %s2165_s26  ;;  %v1910_v11 = vpop.f32.mrb[27].mxu0  ;;  %s1777_s26 = sshll.u32 %s2143_s30, 7  ;;  %s1613_s30 = scalar_lea.sflag [#allocation7], %s346_s23 }
 0x49c   : > { %s2470_s16 = scalar_lea.hbm %s2526_s8, %s1777_s26 }
 0x4a0   : > { %v1279_v12 = vpop.f32.mrb[28].mxu0 }
 0x4a1   : > { %v1786_v13 = vpack.c.bf16 %v1279_v12, %v1279_v12  ;;  %v1921_v14 = vpop.f32.mrb[29].mxu0 }
 0x4a2   : > { %v1282_v15 = vpop.f32.mrb[30].mxu0 }
 0x4a3   : > { %1289 = vrot.lane.b32.xlu1 %v1786_v13, %s2166_s11  ;;  %v1922_v16 = vpop.f32.mrb[31].mxu0  ;;  %s348_s11 = scalar_lea.vmem [#allocation6], %s1727_s21 }
 0x4a4   : > { %s1627_s22 = sshll.u32 %s348_s11, 4  ;;  %s2472_s22 = int_to_ptr.vmem [resolvable:$true] %s1627_s22 }
 0x4a8   : > { %v1404_v18 = vpop.f32.mrb[32].mxu0 }
 0x4a9   : > { %v1787_v20 = vpack.c.bf16 %v1404_v18, %v1404_v18  ;;  %v1933_v21 = vpop.f32.mrb[33].mxu0 }
 0x4aa   : > { %v1407_v22 = vpop.f32.mrb[34].mxu0 }
 0x4ab   : > { %1414 = vrot.lane.b32.xlu0 %v1787_v20, %s2167_s19  ;;  %v1934_v23 = vpop.f32.mrb[35].mxu0  ;;  %s2073_s19 = scalar_lea.vmem %s2472_s22, 128 }
 0x4ac   : > { %p2074_p12 = scmp.ne.s32.totalorder %s2472_s22, %s2073_s19 }
 0x4ae   : > { %p2075_p13 = pnand %p2074_p12, %p2255_p4 }
 0x4b0   : > { %v1529_v34 = vpop.f32.mrb[36].mxu0  ;;  %p2076_p0 = pneg %p2075_p13 }
 0x4b1   : > { %v1788_v24 = vpack.c.bf16 %v1529_v34, %v1529_v34  ;;  %v1945_v25 = vpop.f32.mrb[37].mxu0 }
 0x4b2   : > { %v1532_v26 = vpop.f32.mrb[38].mxu0 }
 0x4b3   : > { %1539 = vrot.lane.b32.xlu1 %v1788_v24, %s2168_s20  ;;  %v1946_v27 = vpop.f32.mrb[39].mxu0  ;;  %s2169_s20 = smov [#allocation6]  }
 0x4b4   : > { %s2077_s21 = sshll.u32 %s2169_s20, 4  ;;  %s2078_s21 = int_to_ptr.vmem [resolvable:$false] %s2077_s21 }
 0x4b5   : > { %s2079_s24 = scalar_lea.vmem %s2078_s21, 256  ;;  %p2080_p1 = scmp.lt.s32.totalorder %s2472_s22, %s2078_s21 }
 0x4b6   : > { %p2081_p2 = scmp.lt.s32.totalorder %s2079_s24, %s2073_s19 }
 0x4b8   : > { %p2082_p3 = por %p2081_p2, %p2080_p1 }
 0x4ba   : > { %p2083_p5 = pnand %p2082_p3, %p2076_p0 }
 0x4d0   : > { %v790_v28 = vpop.permute.xlu1 %789 }
 0x4d1   : > { %793 = vst.msk [vmem:[#allocation5] sm:$0xf] %vm792_vm6, %v790_v28 }
 0x4d8   : > { %v915_v29 = vpop.permute.xlu0 %914 }
 0x4d9   : > { %918 = vst.msk [vmem:[#allocation5] sm:$0xf] %vm917_vm7, %v915_v29 }
 0x4e0   : > { %v1040_v1 = vpop.permute.xlu1 %1039 }
 0x4e1   : > { %1043 = vst.msk [vmem:[#allocation5] sm:$0xf] %vm1042_vm8, %v1040_v1 }
 0x50d   : > { %v1165_v30 = vpop.permute.xlu0 %1164 }
 0x50e   : > { %1168 = vst.msk [vmem:[#allocation5] sm:$0xf] %vm1167_vm9, %v1165_v30 }
 0x515   : > { %v1290_v31 = vpop.permute.xlu1 %1289 }
 0x516   : > { %1293 = vst.msk [vmem:[#allocation5] sm:$0xf] %vm1292_vm10, %v1290_v31 }
 0x51d   : > { %v1415_v32 = vpop.permute.xlu0 %1414 }
 0x51e   : > { %1418 = vst.msk [vmem:[#allocation5] sm:$0xf] %vm1417_vm11, %v1415_v32 }
 0x525   : > { %v1540_v33 = vpop.permute.xlu1 %1539 }
 0x526   : > { %1543 = vst.msk [vmem:[#allocation5] sm:$0xf] %vm1542_vm12, %v1540_v33 }
 0x52d   : > { %v1544_v35 = vld [vmem:[#allocation5] sm:$0xf] }
 0x52e   : > { %1952 = vmatmul.mubr.msk.bf16.vlgmr.msra.gmra.mrb[36].mxu1 %vm491_vm2, %v1544_v35 }
 0x601   : > { %v1605_v37 = vpop.f32.mrb[36].mxu1 }
 0x602   : > { %v1606_v38 = vadd.f32 %v1772_v36, %v1605_v37  ;;  %v1953_v39 = vpop.f32.mrb[37].mxu1 }
 0x603   : > { %v1608_v40 = vpop.f32.mrb[38].mxu1 }
 0x604   : > { %v1954_v41 = vpop.f32.mrb[39].mxu1  ;;  %1611 = vst.msk [vmem:[%s348_s11] sm:$0xff] %vm491_vm2, %v1606_v38 }
 0x605   : > { %2086 = shalt.err (!%p2083_p5)
}
 0x606   : > { %s2087_s23 = scalar_lea.hbm %s2470_s16, 128  ;;  %s2091_s11 = scalar_lea.hbm %s2526_s8, 256 }
 0x607   : > { %p2088_p6 = scmp.ne.s32.totalorder %s2470_s16, %s2087_s23  ;;  %p2092_p10 = scmp.lt.u32.totalorder %s2470_s16, %s2526_s8 }
 0x608   : > { %p2093_p11 = scmp.lt.u32.totalorder %s2091_s11, %s2087_s23  ;;  %p2095_p13 = scmp.lt.u32.totalorder %s2087_s23, %s2470_s16 }
 0x609   : > { %p2089_p7 = pnand %p2088_p6, %p2255_p4 }
 0x60a   : > { %p2094_p12 = por %p2093_p11, %p2092_p10 }
 0x60b   : > { %p2090_p9 = pneg %p2089_p7 }
 0x60c   : > { %p2096_p0 = por %p2095_p13, %p2094_p12 }
 0x60e   : > { %p2097_p1 = pnand %p2096_p0, %p2090_p9 }
 0x610   : > { %2100 = shalt.err (!%p2097_p1)
}
 0x611   : > { %1955 = dma.vmem_to_hbm [thread:$0]  (%p2255_p4), %s2472_s22, 128, %s2470_s16, %s1613_s30  }
 0x612 PF: > { %p1961_p2 = scmp.ge.s32.totalorder %s2151_s10, 2  ;;  %s1639_s19 = sand.u32 1, %s2131_s27  }
 0x613   : > { %s1640_s20 = scalar_lea.sflag [#allocation7], %s1639_s19 }
 0x614   : > { %p1958_p3 = pnand %p1961_p2, %p2262_p8 }
 0x616   : > { %2126 = dma.done.wait (!%p1958_p3), %s1640_s20, 128  }
 0x617   : > { %2128 = vsyncadd (!%p1958_p3), %s1640_s20, 4294967168  ;;  %s21_s10 = sadd.s32 1, %s2151_s10   ;;  %s2529_s27 = smov %s2135_s28 }
 0x618   : > { %p18_p5 = scmp.ge.s32.totalorder %s21_s10, 4   ;;  %s2530_s28 = smov %s2139_s29 }
 0x619   : > { %s2531_s29 = smov %s2268_s18  ;;  %s2532_s30 = smov %s2147_s9 }
 0x61a   : > { %s2533_s9 = smov %s2535_s13  ;;  %20 = sbr.rel (!%p18_p5) target bundleno = 4 (0x4), region = 97 }
 0x621   :  { %1645 = vsyncpa [#allocation7], 1 }
 0x622   :  { %1647 = vsyncpa [#allocation7 + $0x1], 1 }

</bundles_post_ra>
